<compile_context>
chip_gen: v6e
topology: v6e:2x2x1
jax: 0.10.0
libtpu: 0.0.40
codegen_flags: <defaults>
</compile_context>

<pallas_src>
import functools
import math

import jax
import jax.numpy as jnp
from jax import lax
from jax.experimental import pallas as pl
from jax.experimental.pallas import tpu as pltpu

# Big-but-finite mask value: exp(masked - m) underflows to 0 with no inf-inf NaNs.
_MASK_VALUE = -1e30


def _round_up(x, m):
    return ((x + m - 1) // m) * m


def _tpu_generation_and_vmem():
    """Return (generation tag, physical VMEM bytes per TensorCore)."""
    kind = ""
    try:
        kind = jax.devices()[0].device_kind.lower()
    except Exception:
        pass
    if "v7" in kind:
        return "v7x", 64 * 1024 * 1024
    if "v6" in kind:
        return "v6e", 128 * 1024 * 1024
    if "v5" in kind:
        return "v5e", 128 * 1024 * 1024
    return "unknown", 64 * 1024 * 1024  # conservative default (also covers interpret)


def _select_tiles(gen, batch, t_pad):
    """Per-generation (tq, tk); both are 128-multiples that divide t_pad."""
    if gen == "v6e":
        tq, tk = 256, 256                               # fill the 2x256^2 MXU
    elif gen == "v7x":
        tk = 256
        # Megacore: keep B * nq >= 2 so both TensorCores get parallel work.
        tq = 256 if batch * ((t_pad + 255) // 256) >= 2 else 128
    elif gen == "v5e":
        tq, tk = 128, 256                               # 128-wide MXU; wide tk amortizes rescale
    else:
        tq, tk = 128, 256
    tq = min(tq, t_pad)
    tk = min(tk, t_pad)
    if t_pad % tq != 0:
        tq = 128
    if t_pad % tk != 0:
        tk = 128
    return tq, tk


def _maybe_buffered_spec(block_shape, index_map, extra_buffering):
    """k/v BlockSpec, optionally requesting 3-deep pipelining."""
    if extra_buffering:
        try:
            return pl.BlockSpec(block_shape, index_map, pipeline_mode=pl.Buffered(3))
        except TypeError:  # pipeline_mode not available in this jax version
            pass
    return pl.BlockSpec(block_shape, index_map)


def _flash_attn_kernel(q_ref, kt_ref, v_ref, o_ref, m_sc, l_sc, acc_sc, *,
                       scale, kv_len, block_k, mask_keys):
    """One (batch, q-tile, k-tile) grid step of online-softmax attention.

    Layout:
      q_ref: (1, C, tq)   kt_ref: (1, tk, C)   v_ref: (1, C, tk)   o_ref: (1, C, tq)
      scratch: m_sc / l_sc (1, tq) f32, acc_sc (C, tq) f32
    """
    ki = pl.program_id(2)

    @pl.when(ki == 0)
    def _init():
        m_sc[...] = jnp.full_like(m_sc, -jnp.inf)
        # NOTE: acc/l must init to ZERO (not -inf): the first-step alpha=exp(-inf-m)=0
        # relies on multiplying a finite zero accumulator.
        l_sc[...] = jnp.zeros_like(l_sc)
        acc_sc[...] = jnp.zeros_like(acc_sc)

    q = q_ref[0]     # (C, tq)  resident across the ki axis
    kt = kt_ref[0]   # (tk, C)  pre-transposed key tile -> canonical MXU orientation
    v = v_ref[0]     # (C, tk)

    # logits s[j, i] = sum_c kt[j, c] * q[c, i]; f32 accumulation on the MXU.
    s = lax.dot_general(kt, q, (((1,), (0,)), ((), ())),
                        preferred_element_type=jnp.float32)
    # Scale applied once to the f32 logits (q tile is never rescaled per step).
    s = s * scale
    if mask_keys:
        key_idx = ki * block_k + lax.broadcasted_iota(jnp.int32, s.shape, 0)
        s = jnp.where(key_idx < kv_len, s, _MASK_VALUE)

    # Online softmax over the key (sublane) axis; stats are (1, tq) rows that
    # broadcast against the (C, tq) accumulator with no relayout.
    m_prev = m_sc[...]
    m_new = jnp.maximum(m_prev, jnp.max(s, axis=0, keepdims=True))   # (1, tq)
    alpha = jnp.exp(m_prev - m_new)                                   # (1, tq)
    p = jnp.exp(s - m_new)                                            # (tk, tq)

    l_sc[...] = alpha * l_sc[...] + jnp.sum(p, axis=0, keepdims=True)
    # o[c, i] += sum_j v[c, j] * p[j, i]  -> plain (C, tk) x (tk, tq) matmul.
    acc_sc[...] = alpha * acc_sc[...] + lax.dot_general(
        v, p.astype(v.dtype), (((1,), (0,)), ((), ())),
        preferred_element_type=jnp.float32)
    m_sc[...] = m_new

    @pl.when(ki == pl.num_programs(2) - 1)
    def _finalize():
        # Exact reciprocal: a single (1, tq) row, essentially free, keeps the
        # result bit-closer to exact softmax.
        inv_l = pl.reciprocal(l_sc[...], approx=False)
        o_ref[0] = (acc_sc[...] * inv_l).astype(o_ref.dtype)


def flash_spatial_attention(q, kt, v, *, tq=None, tk=None):
    """softmax(q^T k / sqrt(C), over keys) @ v.

    q, v are channel-major (B, C, T); kt is the pre-transposed key (B, T, C) so
    the logits matmul is a canonical (tk, C) x (C, tq) MXU op. Returns (B, C, T).
    """
    B, C, T = q.shape
    assert kt.shape == (B, T, C) and v.shape == (B, C, T)

    gen, vmem_cap = _tpu_generation_and_vmem()
    t_pad = _round_up(T, 128)
    auto_tq, auto_tk = _select_tiles(gen, B, t_pad)
    tq = auto_tq if tq is None else min(tq, t_pad)
    tk = auto_tk if tk is None else min(tk, t_pad)
    # Both tiles must divide the padded sequence; pad a little further if an
    # explicit tile choice requires it (tiles are always 128-multiples).
    t_pad = _round_up(_round_up(t_pad, tq), tk)
    assert t_pad % tq == 0 and t_pad % tk == 0

    pad = t_pad - T
    if pad:
        q = jnp.pad(q, ((0, 0), (0, 0), (0, pad)))
        v = jnp.pad(v, ((0, 0), (0, 0), (0, pad)))
        kt = jnp.pad(kt, ((0, 0), (0, pad), (0, 0)))

    nq, nk = t_pad // tq, t_pad // tk
    scale = float(C) ** -0.5

    # Triple-buffer the k/v streams only when the key loop is long enough for a
    # third buffer to matter and the per-step MXU work is small (small C).
    extra_kv_buffering = (C <= 128) and (nk >= 3)

    # Generation-aware scoped-VMEM budget (blocks + f32 scratch, with headroom,
    # clamped to ~90% of this generation's physical VMEM).
    itemsize = jnp.dtype(q.dtype).itemsize
    kv_bufs = 3 if extra_kv_buffering else 2
    qo_bytes = 2 * (2 * C * tq) * itemsize          # q + o blocks, double-buffered
    kv_bytes = kv_bufs * (2 * C * tk) * itemsize    # k^T + v blocks
    scratch_bytes = (C * tq + 2 * tq) * 4
    needed = qo_bytes + kv_bytes + scratch_bytes
    vmem_limit = int(min(max(2 * needed, 32 * 1024 * 1024), int(0.9 * vmem_cap)))

    kt_spec = _maybe_buffered_spec((1, tk, C), lambda b, qi, ki: (b, ki, 0),
                                   extra_kv_buffering)
    v_spec = _maybe_buffered_spec((1, C, tk), lambda b, qi, ki: (b, 0, ki),
                                  extra_kv_buffering)

    out = pl.pallas_call(
        functools.partial(_flash_attn_kernel, scale=scale, kv_len=T,
                          block_k=tk, mask_keys=(pad != 0)),
        out_shape=jax.ShapeDtypeStruct((B, C, t_pad), q.dtype),
        grid_spec=pltpu.PrefetchScalarGridSpec(
            num_scalar_prefetch=0,
            grid=(B, nq, nk),
            in_specs=[
                pl.BlockSpec((1, C, tq), lambda b, qi, ki: (b, 0, qi)),
                kt_spec,
                v_spec,
            ],
            out_specs=pl.BlockSpec((1, C, tq), lambda b, qi, ki: (b, 0, qi)),
            scratch_shapes=[
                pltpu.VMEM((1, tq), jnp.float32),   # running max  m
                pltpu.VMEM((1, tq), jnp.float32),   # running sum  l
                pltpu.VMEM((C, tq), jnp.float32),   # output accumulator
            ],
        ),
        compiler_params=pltpu.CompilerParams(
            dimension_semantics=("parallel", "parallel", "arbitrary"),
            vmem_limit_bytes=vmem_limit,
        ),
    )(q, kt, v)
    return out[..., :T] if pad else out


# ---- non-attention pieces of the module (dense XLA ops, outside the kernel) ----

def _group_norm(x, gamma, beta, *, num_groups=32, eps=1e-6):
    B, C, H, W = x.shape
    xg = x.reshape(B, num_groups, C // num_groups, H, W)
    mean = jnp.mean(xg, axis=(2, 3, 4), keepdims=True)
    var = jnp.var(xg, axis=(2, 3, 4), keepdims=True)
    xn = ((xg - mean) * lax.rsqrt(var + eps)).reshape(B, C, H, W)
    return xn * gamma.reshape(1, C, 1, 1) + beta.reshape(1, C, 1, 1)


def _conv1x1(x, w, b):
    # Conv2d(C, C, kernel_size=1) == per-pixel channel matmul.
    return jnp.einsum("oc,bchw->bohw", w, x) + b.reshape(1, -1, 1, 1)


def spatial_self_attention(x, params, *, tq=None, tk=None):
    """Forward pass of SpatialSelfAttention: x + proj_out(attn(norm(x)))."""
    B, C, H, W = x.shape
    T = H * W
    h = _group_norm(x, params["norm_g"], params["norm_b"])
    q = _conv1x1(h, params["q_w"], params["q_b"]).reshape(B, C, T)
    # k is emitted pre-transposed (B, T, C) straight from the projection einsum
    # (free in XLA) so the kernel never transposes the key tile.
    kt = (jnp.einsum("oc,bchw->bhwo", params["k_w"], h).reshape(B, T, C)
          + params["k_b"].reshape(1, 1, C))
    v = _conv1x1(h, params["v_w"], params["v_b"]).reshape(B, C, T)
    a = flash_spatial_attention(q, kt, v, tq=tq, tk=tk).reshape(B, C, H, W)
    return x + _conv1x1(a, params["proj_w"], params["proj_b"])


def _reference(x, params):
    """Pure-JAX replica of the PyTorch forward (full softmax) for checking."""
    B, C, H, W = x.shape
    T = H * W
    h = _group_norm(x, params["norm_g"], params["norm_b"])
    q = _conv1x1(h, params["q_w"], params["q_b"]).reshape(B, C, T)
    k = _conv1x1(h, params["k_w"], params["k_b"]).reshape(B, C, T)
    v = _conv1x1(h, params["v_w"], params["v_b"]).reshape(B, C, T)
    w_ = jnp.einsum("bci,bcj->bij", q, k, precision="highest") * (float(C) ** -0.5)
    w_ = jax.nn.softmax(w_, axis=2)
    a = jnp.einsum("bcj,bij->bci", v, w_, precision="highest").reshape(B, C, H, W)
    return x + _conv1x1(a, params["proj_w"], params["proj_b"])


if __name__ == "__main__":
    # C=64 (GroupNorm needs C % 32 == 0).  Three checks:
    #   1) lane-aligned T=16*16=256  (no padding)
    #   2) T=12*12=144               (padding + key-mask path)
    #   3) explicit 128x128 tiles    (multi-key-step online softmax path)
    B, C = 2, 64
    key = jax.random.PRNGKey(0)
    ks = jax.random.split(key, 15)

    def _w(k):
        return jax.random.normal(k, (C, C), jnp.float32) / math.sqrt(C)

    def _b(k):
        return 0.1 * jax.random.normal(k, (C,), jnp.float32)

    params = {
        "norm_g": 1.0 + 0.1 * jax.random.normal(ks[1], (C,), jnp.float32),
        "norm_b": 0.1 * jax.random.normal(ks[2], (C,), jnp.float32),
        "q_w": _w(ks[3]), "q_b": _b(ks[4]),
        "k_w": _w(ks[5]), "k_b": _b(ks[6]),
        "v_w": _w(ks[7]), "v_b": _b(ks[8]),
        "proj_w": _w(ks[9]), "proj_b": _b(ks[10]),
    }

    # 1) main lane-aligned path.
    x1 = jax.random.normal(ks[0], (B, C, 16, 16), dtype=jnp.float32)
    out1 = jax.block_until_ready(spatial_self_attention(x1, params))
    ref1 = _reference(x1, params)
    assert out1.shape == x1.shape
    err1 = float(jnp.max(jnp.abs(out1 - ref1)))
    assert jnp.allclose(out1, ref1, atol=2e-3, rtol=2e-3), f"main path err={err1}"

    # 2) non-128-multiple T -> padding + key masking.
    x2 = jax.random.normal(ks[11], (B, C, 12, 12), dtype=jnp.float32)
    out2 = jax.block_until_ready(spatial_self_attention(x2, params))
    ref2 = _reference(x2, params)
    err2 = float(jnp.max(jnp.abs(out2 - ref2)))
    assert jnp.allclose(out2, ref2, atol=2e-3, rtol=2e-3), f"padded path err={err2}"

    # 3) explicit small tiles -> multiple key steps exercise the online softmax carry.
    T = 256
    q3 = jax.random.normal(ks[12], (B, C, T), dtype=jnp.float32)
    kt3 = jax.random.normal(ks[13], (B, T, C), dtype=jnp.float32)
    v3 = jax.random.normal(ks[14], (B, C, T), dtype=jnp.float32)
    a3 = jax.block_until_ready(flash_spatial_attention(q3, kt3, v3, tq=128, tk=128))
    logits = jnp.einsum("bci,bjc->bij", q3, kt3, precision="highest") * (float(C) ** -0.5)
    w3 = jax.nn.softmax(logits, axis=2)
    a3_ref = jnp.einsum("bcj,bij->bci", v3, w3, precision="highest")
    err3 = float(jnp.max(jnp.abs(a3 - a3_ref)))
    assert jnp.allclose(a3, a3_ref, atol=2e-3, rtol=2e-3), f"multi-step path err={err3}"

    print("KERNEL_OK")
</pallas_src>

<mosaic_0001>
module attributes {stable_mosaic.version = 11 : i64} {
  func.func @_flash_attn_kernel(%arg0: i32, %arg1: i32, %arg2: i32, %arg3: memref<1x64x128xf32, #tpu.memory_space<vmem>>, %arg4: memref<1x256x64xf32, #tpu.memory_space<vmem>>, %arg5: memref<1x64x256xf32, #tpu.memory_space<vmem>>, %arg6: memref<1x64x128xf32, #tpu.memory_space<vmem>>, %arg7: memref<1x128xf32, #tpu.memory_space<vmem>>, %arg8: memref<1x128xf32, #tpu.memory_space<vmem>>, %arg9: memref<64x128xf32, #tpu.memory_space<vmem>>) attributes {dimension_semantics = [#tpu.dimension_semantics<parallel>, #tpu.dimension_semantics<parallel>, #tpu.dimension_semantics<arbitrary>], iteration_bounds = array<i64: 2, 2, 1>, scalar_prefetch = 0 : i64, scratch_operands = 3 : i64, tpu.core_type = #tpu.core_type<tc>, window_params = [{transform_indices = @transform_0, window_bounds = array<i64: 1, 64, 128>}, {transform_indices = @transform_1, window_bounds = array<i64: 1, 256, 64>}, {transform_indices = @transform_2, window_bounds = array<i64: 1, 64, 256>}, {transform_indices = @transform_3, window_bounds = array<i64: 1, 64, 128>}]} {
    %c0_i32 = arith.constant 0 : i32
    %0 = arith.cmpi eq, %arg2, %c0_i32 : i32
    %1 = arith.extui %0 : i1 to i32
    %c0_i32_0 = arith.constant 0 : i32
    %2 = arith.cmpi ne, %1, %c0_i32_0 : i32
    scf.if %2 {
      %cst_27 = arith.constant 0xFF800000 : f32
      %37 = vector.broadcast %cst_27 : f32 to vector<1x128xf32>
      %c0_28 = arith.constant 0 : index
      %c0_29 = arith.constant 0 : index
      %38 = vector.load %arg7[%c0_28, %c0_29] : memref<1x128xf32, #tpu.memory_space<vmem>>, vector<1x128xf32>
      tpu.vector_store %arg7[%c0_28, %c0_29], %37 {strides = array<i32>} : memref<1x128xf32, #tpu.memory_space<vmem>>, vector<1x128xf32>,
      %cst_30 = arith.constant 0.000000e+00 : f32
      %39 = vector.broadcast %cst_30 : f32 to vector<1x128xf32>
      %c0_31 = arith.constant 0 : index
      %c0_32 = arith.constant 0 : index
      %40 = vector.load %arg8[%c0_31, %c0_32] : memref<1x128xf32, #tpu.memory_space<vmem>>, vector<1x128xf32>
      tpu.vector_store %arg8[%c0_31, %c0_32], %39 {strides = array<i32>} : memref<1x128xf32, #tpu.memory_space<vmem>>, vector<1x128xf32>,
      %cst_33 = arith.constant 0.000000e+00 : f32
      %41 = vector.broadcast %cst_33 : f32 to vector<64x128xf32>
      %c0_34 = arith.constant 0 : index
      %c0_35 = arith.constant 0 : index
      %42 = vector.load %arg9[%c0_34, %c0_35] : memref<64x128xf32, #tpu.memory_space<vmem>>, vector<64x128xf32>
      tpu.vector_store %arg9[%c0_34, %c0_35], %41 {strides = array<i32>} : memref<64x128xf32, #tpu.memory_space<vmem>>, vector<64x128xf32>,
    } else {
    }
    %c0 = arith.constant 0 : index
    %c0_1 = arith.constant 0 : index
    %c0_2 = arith.constant 0 : index
    %3 = vector.load %arg3[%c0, %c0_1, %c0_2] : memref<1x64x128xf32, #tpu.memory_space<vmem>>, vector<1x64x128xf32>
    %4 = vector.shape_cast %3 : vector<1x64x128xf32> to vector<64x128xf32>
    %c0_3 = arith.constant 0 : index
    %c0_4 = arith.constant 0 : index
    %c0_5 = arith.constant 0 : index
    %5 = vector.load %arg4[%c0_3, %c0_4, %c0_5] : memref<1x256x64xf32, #tpu.memory_space<vmem>>, vector<1x256x64xf32>
    %6 = vector.shape_cast %5 : vector<1x256x64xf32> to vector<256x64xf32>
    %c0_6 = arith.constant 0 : index
    %c0_7 = arith.constant 0 : index
    %c0_8 = arith.constant 0 : index
    %7 = vector.load %arg5[%c0_6, %c0_7, %c0_8] : memref<1x64x256xf32, #tpu.memory_space<vmem>>, vector<1x64x256xf32>
    %8 = vector.shape_cast %7 : vector<1x64x256xf32> to vector<64x256xf32>
    %cst = arith.constant dense<0.000000e+00> : vector<256x128xf32>
    %9 = tpu.matmul %6, %4, %cst {dimension_numbers = #tpu.dot_dimension_numbers<[1], [0], [0], [1], [0, 0, 1, 1], [], []>} : vector<256x64xf32>, vector<64x128xf32>, vector<256x128xf32> -> vector<256x128xf32>
    %cst_9 = arith.constant 1.250000e-01 : f32
    %10 = vector.broadcast %cst_9 : f32 to vector<256x128xf32>
    %11 = arith.mulf %9, %10 : vector<256x128xf32>
    %c0_10 = arith.constant 0 : index
    %c0_11 = arith.constant 0 : index
    %12 = vector.load %arg7[%c0_10, %c0_11] : memref<1x128xf32, #tpu.memory_space<vmem>>, vector<1x128xf32>
    %cst_12 = arith.constant dense<0xFF800000> : vector<128xf32>
    %13 = vector.multi_reduction <maximumf>, %11, %cst_12 [0] : vector<256x128xf32> to vector<128xf32>
    %14 = vector.shape_cast %13 : vector<128xf32> to vector<1x128xf32>
    %15 = arith.maximumf %12, %14 : vector<1x128xf32>
    %16 = arith.subf %12, %15 : vector<1x128xf32>
    %17 = math.exp %16 : vector<1x128xf32>
    %18 = vector.broadcast %15 : vector<1x128xf32> to vector<256x128xf32>
    %19 = arith.subf %11, %18 : vector<256x128xf32>
    %20 = math.exp %19 : vector<256x128xf32>
    %c0_13 = arith.constant 0 : index
    %c0_14 = arith.constant 0 : index
    %21 = vector.load %arg8[%c0_13, %c0_14] : memref<1x128xf32, #tpu.memory_space<vmem>>, vector<1x128xf32>
    %22 = arith.mulf %17, %21 : vector<1x128xf32>
    %cst_15 = arith.constant dense<0.000000e+00> : vector<128xf32>
    %23 = vector.multi_reduction <add>, %20, %cst_15 [0] : vector<256x128xf32> to vector<128xf32>
    %24 = vector.shape_cast %23 : vector<128xf32> to vector<1x128xf32>
    %25 = arith.addf %22, %24 : vector<1x128xf32>
    %c0_16 = arith.constant 0 : index
    %c0_17 = arith.constant 0 : index
    %26 = vector.load %arg8[%c0_16, %c0_17] : memref<1x128xf32, #tpu.memory_space<vmem>>, vector<1x128xf32>
    tpu.vector_store %arg8[%c0_16, %c0_17], %25 {strides = array<i32>} : memref<1x128xf32, #tpu.memory_space<vmem>>, vector<1x128xf32>,
    %c0_18 = arith.constant 0 : index
    %c0_19 = arith.constant 0 : index
    %27 = vector.load %arg9[%c0_18, %c0_19] : memref<64x128xf32, #tpu.memory_space<vmem>>, vector<64x128xf32>
    %28 = vector.broadcast %17 : vector<1x128xf32> to vector<64x128xf32>
    %29 = arith.mulf %28, %27 : vector<64x128xf32>
    %cst_20 = arith.constant dense<0.000000e+00> : vector<64x128xf32>
    %30 = tpu.matmul %8, %20, %cst_20 {dimension_numbers = #tpu.dot_dimension_numbers<[1], [0], [0], [1], [0, 0, 1, 1], [], []>} : vector<64x256xf32>, vector<256x128xf32>, vector<64x128xf32> -> vector<64x128xf32>
    %31 = arith.addf %29, %30 : vector<64x128xf32>
    %c0_21 = arith.constant 0 : index
    %c0_22 = arith.constant 0 : index
    %32 = vector.load %arg9[%c0_21, %c0_22] : memref<64x128xf32, #tpu.memory_space<vmem>>, vector<64x128xf32>
    tpu.vector_store %arg9[%c0_21, %c0_22], %31 {strides = array<i32>} : memref<64x128xf32, #tpu.memory_space<vmem>>, vector<64x128xf32>,
    %c0_23 = arith.constant 0 : index
    %c0_24 = arith.constant 0 : index
    %33 = vector.load %arg7[%c0_23, %c0_24] : memref<1x128xf32, #tpu.memory_space<vmem>>, vector<1x128xf32>
    tpu.vector_store %arg7[%c0_23, %c0_24], %15 {strides = array<i32>} : memref<1x128xf32, #tpu.memory_space<vmem>>, vector<1x128xf32>,
    %c0_i32_25 = arith.constant 0 : i32
    %34 = arith.cmpi eq, %arg2, %c0_i32_25 : i32
    %35 = arith.extui %34 : i1 to i32
    %c0_i32_26 = arith.constant 0 : i32
    %36 = arith.cmpi ne, %35, %c0_i32_26 : i32
    scf.if %36 {
      %c0_27 = arith.constant 0 : index
      %c0_28 = arith.constant 0 : index
      %37 = vector.load %arg8[%c0_27, %c0_28] : memref<1x128xf32, #tpu.memory_space<vmem>>, vector<1x128xf32>
      %38 = tpu.reciprocal %37 : vector<1x128xf32> -> vector<1x128xf32>
      %c0_29 = arith.constant 0 : index
      %c0_30 = arith.constant 0 : index
      %39 = vector.load %arg9[%c0_29, %c0_30] : memref<64x128xf32, #tpu.memory_space<vmem>>, vector<64x128xf32>
      %40 = vector.broadcast %38 : vector<1x128xf32> to vector<64x128xf32>
      %41 = arith.mulf %39, %40 : vector<64x128xf32>
      %c0_31 = arith.constant 0 : index
      %c0_32 = arith.constant 0 : index
      %c0_33 = arith.constant 0 : index
      %42 = vector.load %arg6[%c0_31, %c0_32, %c0_33] : memref<1x64x128xf32, #tpu.memory_space<vmem>>, vector<1x64x128xf32>
      %43 = vector.shape_cast %42 : vector<1x64x128xf32> to vector<64x128xf32>
      %44 = vector.shape_cast %41 : vector<64x128xf32> to vector<1x64x128xf32>
      tpu.vector_store %arg6[%c0_31, %c0_32, %c0_33], %44 {strides = array<i32>} : memref<1x64x128xf32, #tpu.memory_space<vmem>>, vector<1x64x128xf32>,
    } else {
    }
    return
  }
  func.func @transform_0(%arg0: i32, %arg1: i32, %arg2: i32) -> (i32, i32, i32) {
    %c0_i32 = arith.constant 0 : i32
    %c0_i32_0 = arith.constant 0 : i32
    return %arg0, %c0_i32, %arg1 : i32, i32, i32
  }
  func.func @transform_1(%arg0: i32, %arg1: i32, %arg2: i32) -> (i32, i32, i32) {
    %c0_i32 = arith.constant 0 : i32
    %c0_i32_0 = arith.constant 0 : i32
    return %arg0, %arg2, %c0_i32 : i32, i32, i32
  }
  func.func @transform_2(%arg0: i32, %arg1: i32, %arg2: i32) -> (i32, i32, i32) {
    %c0_i32 = arith.constant 0 : i32
    %c0_i32_0 = arith.constant 0 : i32
    return %arg0, %c0_i32, %arg2 : i32, i32, i32
  }
  func.func @transform_3(%arg0: i32, %arg1: i32, %arg2: i32) -> (i32, i32, i32) {
    %c0_i32 = arith.constant 0 : i32
    %c0_i32_0 = arith.constant 0 : i32
    return %arg0, %c0_i32, %arg1 : i32, i32, i32
  }
}

</mosaic_0001>

<bundles_post_ra>
// kernel: tpu_custom_call.1
= control target key start
LH: loop header
LB: loop body
LE: loop exit
PB: predicated region body
PF: predicated region fallthrough
CT: control target
= control target key end

     0   :  { %8 = vsyncpa [#allocation7], 0  ;;  %s2223_s0 = inlined_call_operand.vmem [shape: f32[2,64,256], index: 0, kind: input, shape index: {}]   ;;  %s2224_s1 = inlined_call_operand.vmem [shape: f32[2,256,64], index: 1, kind: input, shape index: {}]   ;;  %s2225_s2 = inlined_call_operand.vmem [shape: f32[2,64,256], index: 2, kind: input, shape index: {}]   ;;  %s2226_s3 = inlined_call_operand.hbm [shape: f32[2,64,256], index: 3, kind: output, shape index: {}]  }
   0x1   :  { %10 = vsyncpa [#allocation7 + $0x1], 0  ;;  %s1731_s12 = smov 0   ;;  %s1733_s13 = smov 0  }
   0x2   :  { %s1735_s14 = smov 0   ;;  %s1737_s15 = smov 0  }
   0x3   :  { %s1739_s16 = smov 0   ;;  %s1741_s17 = smov 0  }
   0x4   :  { %s1743_s18 = smov 0   ;;  %s1745_s19 = smov 0  }
   0x5 LB: > { %s1254_s20 = sadd.s32 4294967295, %s1703_s19   ;;  %s1255_s21 = sadd.s32 4294967294, %s1703_s19   ;;  %s1703_s19 = sphi %s1745_s19, %s16_s19   ;;  %s1699_s18 = sphi %s1743_s18, %s2236_s18   ;;  %s1695_s17 = sphi %s1741_s17, %s2235_s17   ;;  %s1691_s16 = sphi %s1739_s16, %s2234_s16   ;;  %s1687_s15 = sphi %s1737_s15, %s2233_s15   ;;  %s1683_s14 = sphi %s1735_s14, %s2232_s14   ;;  %s1679_s13 = sphi %s1733_s13, %s2231_s13   ;;  %s1675_s12 = sphi %s1731_s12, %s2230_s12  }
   0x6   : > { %s31_s22 = sadd.s32 1, %s1695_s17  ;;  %s35_s23 = sadd.s32 1, %s1699_s18 }
   0x7   : > { %p33_p0 = scmp.ge.s32.totalorder %s31_s22, 2  ;;  %p51_p1 = scmp.ne.s32.totalorder %s1683_s14, %s1679_s13 }
   0x8   : > { %p52_p2 = scmp.eq.s32.totalorder %s1703_s19, 0  ;;  %p139_p5 = scmp.eq.s32.totalorder %s1254_s20, 3 }
   0x9   : > { %s2238_s22 = smov (%p33_p0, %s31_s22), 0  ;;  %s2240_s23 = smov (!%p33_p0, %s35_s23), %s1699_s18 }
   0xa   : > { %s40_s24 = ssub.s32 %s1695_s17, %s2238_s22  ;;  %p1783_p3 = por %p52_p2, %p51_p1 }
   0xb   : > { %p37_p4 = scmp.ge.s32.totalorder %s2240_s23, 2  ;;  %p144_p6 = scmp.ne.s32.totalorder %s1679_s13, %s1675_s12 }
   0xc   : > { %p145_p7 = scmp.eq.s32.totalorder %s1255_s21, 3  ;;  %p1791_p8 = por %p139_p5, %p51_p1 }
   0xd   : > { %s2242_s23 = smov (%p37_p4, %s2240_s23), 0  ;;  %s44_s30 = sadd.s32 1, %s1683_s14 }
   0xe   : > { %p1795_p9 = por %p145_p7, %p144_p6  ;;  %s39_s28 = ssub.s32 %s1699_s18, %s2242_s23 }
   0xf   : > { %s41_s29 = sor.u32 %s40_s24, %s39_s28  ;;  %p1257_p11 = scmp.ge.s32.totalorder %s1703_s19, 4 }
  0x10   : > { %p42_p10 = scmp.eq.s32.totalorder %s41_s29, 0 }
  0x11   : > { %161 = sbr.rel (%p1257_p11) target bundleno = 32 (0x20), region = 16 }
  0x12   : > { %s1803_s4 = scalar_select %p42_p10, %s1683_s14, %s44_s30  }
  0x16   : > { %164 = sbr.rel (!%p1783_p3) target bundleno = 32 (0x20), region = 20  ;;  %s166_s5 = sand.u32 (%p1783_p3), 1, %s1683_s14  }
  0x17   : > { %s1259_s6 = sshll.u32 (%p1783_p3), %s1699_s18, 4  ;;  %s1258_s7 = sshll.u32 (%p1783_p3), %s166_s5, 6 }
  0x18   : > { %s170_s8 = sadd.s32 (%p1783_p3), %s1695_s17, %s1259_s6  ;;  %s168_s21 = scalar_lea.vmem (%p1783_p3), [#allocation5], %s1258_s7 }
  0x19   : > { %s1260_s9 = sshll.u32 (%p1783_p3), %s170_s8, 3 }
  0x1a   : > { %s172_s20 = scalar_lea.vmem (%p1783_p3), %s2223_s0, %s1260_s9 }
  0x1b   : > { %v215_v0 = vld [vmem:[%s172_s20] sm:$0xff]  ;;  %v217_v1 = vld [vmem:[%s172_s20 + $0x10] sm:$0xff] }
  0x1c   : > { %v219_v2 = vld [vmem:[%s172_s20 + $0x20] sm:$0xff]  ;;  %216 = vst [vmem:[%s168_s21] sm:$0xff] %v215_v0  ;;  %218 = vst [vmem:[%s168_s21 + $0x8] sm:$0xff] %v217_v1  ;;  %v221_v3 = vld [vmem:[%s172_s20 + $0x30] sm:$0xff] }
  0x1d   : > { %220 = vst [vmem:[%s168_s21 + $0x10] sm:$0xff] %v219_v2  ;;  %v223_v4 = vld [vmem:[%s172_s20 + $0x40] sm:$0xff]  ;;  %v225_v5 = vld [vmem:[%s172_s20 + $0x50] sm:$0xff]  ;;  %222 = vst [vmem:[%s168_s21 + $0x18] sm:$0xff] %v221_v3 }
  0x1e   : > { %224 = vst [vmem:[%s168_s21 + $0x20] sm:$0xff] %v223_v4  ;;  %226 = vst [vmem:[%s168_s21 + $0x28] sm:$0xff] %v225_v5  ;;  %v227_v6 = vld [vmem:[%s172_s20 + $0x60] sm:$0xff]  ;;  %v229_v7 = vld [vmem:[%s172_s20 + $0x70] sm:$0xff] }
  0x1f   : > { %228 = vst [vmem:[%s168_s21 + $0x30] sm:$0xff] %v227_v6  ;;  %230 = vst [vmem:[%s168_s21 + $0x38] sm:$0xff] %v229_v7 }
  0x20 PF: > { %p1261_p12 = scmp.ge.s32.totalorder %s1703_s19, 1  ;;  %p261_p13 = scmp.lt.s32.totalorder %s1703_s19, 5 }
  0x22   : > { %p262_p0 = pnand %p1261_p12, %p261_p13 }
  0x23   : > { %s268_s24 = sand.u32 (!%p262_p0), 1, %s1679_s13   ;;  %p310_p1 = scmp.lt.s32.totalorder (!%p262_p0), %s1691_s16, 1 }
  0x24   : > { %265 = sbr.rel (%p262_p0) target bundleno = 648 (0x288), region = 66  ;;  %s1819_s25 = sshll.u32 (!%p262_p0), %s268_s24, 6 }
  0x25   : > { %s270_s28 = scalar_lea.vmem (!%p262_p0), [#allocation5], %s1819_s25  ;;  %s2150_s20 = scalar_lea.vmem (!%p262_p0), [#allocation6], %s1819_s25 }
  0x26   : > { %s1301_s21 = sshll.u32 (!%p262_p0), %s1691_s16, 4 }
  0x27   : > { %s1129_s25 = sadd.s32 (!%p262_p0), %s1687_s15, %s1301_s21  ;;  %s2172_s15 = scalar_lea.sflag (!%p262_p0), [#allocation7], %s268_s24 }
  0x29   : > { %v350_v8 = vld [vmem:[%s270_s28 + $0x38] sm:$0xff]  ;;  %v349_v9 = vld [vmem:[%s270_s28 + $0x30] sm:$0xff]  ;;  %v348_v10 = vld [vmem:[%s270_s28 + $0x28] sm:$0xff]  ;;  %s1824_s29 = scalar_select %p310_p1, %s1691_s16, 1  ;;  %vm399_vm0 = vcmask 523264   ;;  %v1705_v48 = vmov -inf  }
  0x2a   : > { %1403 = vmatprep.subr.mxu0 %v350_v8  ;;  %v347_v11 = vld [vmem:[%s270_s28 + $0x20] sm:$0xff]  ;;  %v346_v12 = vld [vmem:[%s270_s28 + $0x18] sm:$0xff]  ;;  %v345_v14 = vld [vmem:[%s270_s28 + $0x10] sm:$0xff]  ;;  %333 = vst [vmem:[#allocation2] sm:$0x1] %v1705_v48  ;;  %v1706_v49 = vmov 0.0  }
  0x2b   : > { %1404 = vmatpush3.msra.mxu0 %v350_v8  ;;  %s1305_s30 = sshll.u32 %s1824_s29, 8  ;;  %v344_v15 = vld [vmem:[%s270_s28 + $0x8] sm:$0xff]  ;;  %v343_v16 = vld [vmem:[%s270_s28] sm:$0xff]  ;;  %334 = vst [vmem:[#allocation3] sm:$0x1] %v1706_v49  ;;  %s1306_s8 = sshll.u32 %s1824_s29, 7 }
  0x2c   : > { %1405 = vmatprep.subr.mxu0 %v349_v9  ;;  %s1830_s7 = scalar_lea.vmem %s2224_s1, %s1305_s30  ;;  %s1900_s11 = scalar_lea.vmem %s2225_s2, %s1306_s8 }
  0x2d   : > { %1406 = vmatpush3.msra.mxu0 %v349_v9  ;;  %v351_v13 = vld [vmem:[%s1830_s7] sm:$0xff]  ;;  %v352_v17 = vld [vmem:[%s1830_s7 + $0x8] sm:$0xff]  ;;  %v353_v18 = vld [vmem:[%s1830_s7 + $0x10] sm:$0xff]  ;;  %s1132_s28 = sshll.u32 %s2150_s20, 4  ;;  %s1302_s29 = sshll.u32 %s1129_s25, 7  ;;  %s2161_s28 = int_to_ptr.vmem [resolvable:$true] %s1132_s28 }
  0x2e   : > { %1407 = vmatprep.subr.mxu0 %v348_v10  ;;  %1419 = vmatprep.mubr.msk.f32.mxu0 %vm399_vm0, %v351_v13  ;;  %v354_v19 = vld [vmem:[%s1830_s7 + $0x18] sm:$0xff]  ;;  %v355_v20 = vld [vmem:[%s1830_s7 + $0x20] sm:$0xff]  ;;  %v356_v21 = vld [vmem:[%s1830_s7 + $0x28] sm:$0xff]  ;;  %s2167_s5 = scalar_lea.hbm %s2226_s3, %s1302_s29  ;;  %s1611_s6 = scalar_lea.vmem %s2161_s28, 1024 }
  0x2f   : > { %1408 = vmatpush3.msra.mxu0 %v348_v10  ;;  %v357_v22 = vld [vmem:[%s1830_s7 + $0x30] sm:$0xff]  ;;  %v358_v23 = vld [vmem:[%s1830_s7 + $0x38] sm:$0xff]  ;;  %v359_v24 = vld [vmem:[%s1830_s7 + $0x40] sm:$0xff]  ;;  %p1612_p2 = scmp.ne.s32.totalorder %s2161_s28, %s1611_s6 }
  0x30   : > { %1409 = vmatprep.subr.mxu0 %v347_v11  ;;  %v360_v25 = vld [vmem:[%s1830_s7 + $0x48] sm:$0xff]  ;;  %v361_v26 = vld [vmem:[%s1830_s7 + $0x50] sm:$0xff]  ;;  %v362_v27 = vld [vmem:[%s1830_s7 + $0x58] sm:$0xff] }
  0x31   : > { %1410 = vmatpush3.msra.mxu0 %v347_v11  ;;  %v363_v28 = vld [vmem:[%s1830_s7 + $0x60] sm:$0xff]  ;;  %v364_v29 = vld [vmem:[%s1830_s7 + $0x68] sm:$0xff]  ;;  %v365_v30 = vld [vmem:[%s1830_s7 + $0x70] sm:$0xff]  ;;  %p1613_p3 = pnand %p1612_p2, %p1791_p8 }
  0x32   : > { %1411 = vmatprep.subr.mxu0 %v346_v12  ;;  %v366_v31 = vld [vmem:[%s1830_s7 + $0x78] sm:$0xff]  ;;  %v367_v32 = vld [vmem:[%s1830_s7 + $0x80] sm:$0xff]  ;;  %v368_v33 = vld [vmem:[%s1830_s7 + $0x88] sm:$0xff] }
  0x33   : > { %1412 = vmatpush3.msra.mxu0 %v346_v12  ;;  %v369_v34 = vld [vmem:[%s1830_s7 + $0x90] sm:$0xff]  ;;  %v370_v35 = vld [vmem:[%s1830_s7 + $0x98] sm:$0xff]  ;;  %v371_v36 = vld [vmem:[%s1830_s7 + $0xa0] sm:$0xff]  ;;  %p1614_p4 = pneg %p1613_p3 }
  0x34   : > { %1413 = vmatprep.subr.mxu0 %v345_v14  ;;  %v372_v37 = vld [vmem:[%s1830_s7 + $0xa8] sm:$0xff]  ;;  %v373_v38 = vld [vmem:[%s1830_s7 + $0xb0] sm:$0xff]  ;;  %v374_v39 = vld [vmem:[%s1830_s7 + $0xb8] sm:$0xff] }
  0x35   : > { %1414 = vmatpush3.msra.mxu0 %v345_v14  ;;  %v375_v40 = vld [vmem:[%s1830_s7 + $0xc0] sm:$0xff]  ;;  %v376_v41 = vld [vmem:[%s1830_s7 + $0xc8] sm:$0xff]  ;;  %v377_v42 = vld [vmem:[%s1830_s7 + $0xd0] sm:$0xff] }
  0x36   : > { %1415 = vmatprep.subr.mxu0 %v344_v15  ;;  %v378_v43 = vld [vmem:[%s1830_s7 + $0xd8] sm:$0xff]  ;;  %v379_v44 = vld [vmem:[%s1830_s7 + $0xe0] sm:$0xff]  ;;  %v380_v45 = vld [vmem:[%s1830_s7 + $0xe8] sm:$0xff] }
  0x37   : > { %1416 = vmatpush3.msra.mxu0 %v344_v15  ;;  %v381_v46 = vld [vmem:[%s1830_s7 + $0xf0] sm:$0xff]  ;;  %v382_v47 = vld [vmem:[%s1830_s7 + $0xf8] sm:$0xff]  ;;  %v384_v9 = vld [vmem:[%s1900_s11 + $0x8] sm:$0xff]  ;;  %s1707_s7 = smov [#allocation6]  }
  0x38   : > { %1417 = vmatprep.subr.mxu0 %v343_v16  ;;  %1024 = vmatprep.mubr.f32.mxu1 %v384_v9  ;;  %s1615_s8 = sshll.u32 %s1707_s7, 4  ;;  %s1616_s8 = int_to_ptr.vmem [resolvable:$false] %s1615_s8 }
  0x39   : > { %1418 = vmatpush3.msra.mxu0 %v343_v16  ;;  %s1617_s9 = scalar_lea.vmem %s1616_s8, 2048  ;;  %p1618_p5 = scmp.lt.s32.totalorder %s2161_s28, %s1616_s8 }
  0x3a   : > { %1420 = vmatmul.mubr.msk.f32.vlgmr.msra.gmra.mxu0 %vm399_vm0, %v352_v17  ;;  %p1619_p6 = scmp.lt.s32.totalorder %s1617_s9, %s1611_s6 }
  0x3b   : > { %1422 = vmatprep.mubr.msk.f32.mxu0 %vm399_vm0, %v353_v18 }
  0x3c   : > { %p1620_p7 = por %p1619_p6, %p1618_p5 }
  0x3e   : > { %1423 = vmatmul.mubr.msk.f32.gmra.mxu0 %vm399_vm0, %v354_v19  ;;  %p1621_p10 = pnand %p1620_p7, %p1614_p4 }
  0x3f   : > { %1425 = vmatprep.mubr.msk.f32.mxu0 %vm399_vm0, %v355_v20 }
  0x42   : > { %1426 = vmatmul.mubr.msk.f32.gmra.mxu0 %vm399_vm0, %v356_v21 }
  0x43   : > { %1428 = vmatprep.mubr.msk.f32.mxu0 %vm399_vm0, %v357_v22 }
  0x46   : > { %1429 = vmatmul.mubr.msk.f32.gmra.mxu0 %vm399_vm0, %v358_v23 }
  0x47   : > { %1431 = vmatprep.mubr.msk.f32.mxu0 %vm399_vm0, %v359_v24 }
  0x4a   : > { %1432 = vmatmul.mubr.msk.f32.gmra.mxu0 %vm399_vm0, %v360_v25 }
  0x4b   : > { %1434 = vmatprep.mubr.msk.f32.mxu0 %vm399_vm0, %v361_v26 }
  0x4e   : > { %1435 = vmatmul.mubr.msk.f32.gmra.mxu0 %vm399_vm0, %v362_v27 }
  0x4f   : > { %1437 = vmatprep.mubr.msk.f32.mxu0 %vm399_vm0, %v363_v28 }
  0x52   : > { %1438 = vmatmul.mubr.msk.f32.gmra.mxu0 %vm399_vm0, %v364_v29 }
  0x53   : > { %1440 = vmatprep.mubr.msk.f32.mxu0 %vm399_vm0, %v365_v30 }
  0x56   : > { %1441 = vmatmul.mubr.msk.f32.gmra.mxu0 %vm399_vm0, %v366_v31 }
  0x57   : > { %1443 = vmatprep.mubr.msk.f32.mxu0 %vm399_vm0, %v367_v32 }
  0x5a   : > { %1444 = vmatmul.mubr.msk.f32.gmra.mxu0 %vm399_vm0, %v368_v33 }
  0x5b   : > { %1446 = vmatprep.mubr.msk.f32.mxu0 %vm399_vm0, %v369_v34 }
  0x5e   : > { %1447 = vmatmul.mubr.msk.f32.gmra.mxu0 %vm399_vm0, %v370_v35 }
  0x5f   : > { %1449 = vmatprep.mubr.msk.f32.mxu0 %vm399_vm0, %v371_v36 }
  0x62   : > { %1450 = vmatmul.mubr.msk.f32.gmra.mxu0 %vm399_vm0, %v372_v37 }
  0x63   : > { %1452 = vmatprep.mubr.msk.f32.mxu0 %vm399_vm0, %v373_v38 }
  0x66   : > { %1453 = vmatmul.mubr.msk.f32.gmra.mxu0 %vm399_vm0, %v374_v39 }
  0x67   : > { %1455 = vmatprep.mubr.msk.f32.mxu0 %vm399_vm0, %v375_v40 }
  0x6a   : > { %1456 = vmatmul.mubr.msk.f32.gmra.mxu0 %vm399_vm0, %v376_v41 }
  0x6b   : > { %1458 = vmatprep.mubr.msk.f32.mxu0 %vm399_vm0, %v377_v42 }
  0x6e   : > { %1459 = vmatmul.mubr.msk.f32.gmra.mxu0 %vm399_vm0, %v378_v43 }
  0x6f   : > { %1461 = vmatprep.mubr.msk.f32.mxu0 %vm399_vm0, %v379_v44 }
  0x72   : > { %1462 = vmatmul.mubr.msk.f32.gmra.mxu0 %vm399_vm0, %v380_v45 }
  0x73   : > { %1464 = vmatprep.mubr.msk.f32.mxu0 %vm399_vm0, %v381_v46 }
  0x76   : > { %1465 = vmatmul.mubr.msk.f32.gmra.mxu0 %vm399_vm0, %v382_v47 }
  0xfa   : > { %v1421_v50 = vpop.f32.mrf.mxu0 }
  0xfb   : > { %v1909_v14 = vmul.f32 0.125, %v1421_v50 }
  0xfc   : > { %v562_v51 = vpop.f32.mrf.mxu0 }
  0xfd   : > { %v1911_v15 = vmul.f32 0.125, %v562_v51 }
  0xfe   : > { %v1424_v52 = vpop.f32.mrf.mxu0 }
  0xff   : > { %v1915_v18 = vmul.f32 0.125, %v1424_v52 }
 0x100   : > { %v572_v53 = vpop.f32.mrf.mxu0 }
 0x101   : > { %v1923_v22 = vmul.f32 0.125, %v572_v53 }
 0x102   : > { %v1427_v54 = vpop.f32.mrf.mxu0 }
 0x103   : > { %v1903_v10 = vmul.f32 0.125, %v1427_v54 }
 0x104   : > { %v582_v55 = vpop.f32.mrf.mxu0 }
 0x105   : > { %v1905_v12 = vmul.f32 0.125, %v582_v55  ;;  %v755_v23 = vmax.f32 %v1909_v14, %v1903_v10 }
 0x106   : > { %v1430_v56 = vpop.f32.mrf.mxu0 }
 0x107   : > { %v1907_v13 = vmul.f32 0.125, %v1430_v56  ;;  %v754_v26 = vmax.f32 %v1911_v15, %v1905_v12 }
 0x108   : > { %v592_v57 = vpop.f32.mrf.mxu0 }
 0x109   : > { %v1913_v16 = vmul.f32 0.125, %v592_v57  ;;  %v757_v27 = vmax.f32 %v1915_v18, %v1907_v13 }
 0x10a   : > { %v1433_v58 = vpop.f32.mrf.mxu0 }
 0x10b   : > { %v1917_v19 = vmul.f32 0.125, %v1433_v58  ;;  %v756_v30 = vmax.f32 %v1923_v22, %v1913_v16 }
 0x10c   : > { %v602_v59 = vpop.f32.mrf.mxu0 }
 0x10d   : > { %v1919_v20 = vmul.f32 0.125, %v602_v59  ;;  %v759_v34 = vmax.f32 %v755_v23, %v1917_v19 }
 0x10e   : > { %v1436_v60 = vpop.f32.mrf.mxu0 }
 0x10f   : > { %v1921_v21 = vmul.f32 0.125, %v1436_v60  ;;  %v758_v35 = vmax.f32 %v754_v26, %v1919_v20 }
 0x110   : > { %v612_v61 = vpop.f32.mrf.mxu0 }
 0x111   : > { %v1927_v24 = vmul.f32 0.125, %v612_v61  ;;  %v761_v36 = vmax.f32 %v757_v27, %v1921_v21 }
 0x112   : > { %v1439_v62 = vpop.f32.mrf.mxu0 }
 0x113   : > { %v1933_v28 = vmul.f32 0.125, %v1439_v62  ;;  %v760_v38 = vmax.f32 %v756_v30, %v1927_v24 }
 0x114   : > { %v622_v63 = vpop.f32.mrf.mxu0 }
 0x115   : > { %v1935_v29 = vmul.f32 0.125, %v622_v63  ;;  %v763_v43 = vmax.f32 %v759_v34, %v1933_v28 }
 0x116   : > { %v1442_v0 = vpop.f32.mrf.mxu0 }
 0x117   : > { %v1939_v31 = vmul.f32 0.125, %v1442_v0  ;;  %v762_v44 = vmax.f32 %v758_v35, %v1935_v29 }
 0x118   : > { %v632_v1 = vpop.f32.mrf.mxu0 }
 0x119   : > { %v1941_v32 = vmul.f32 0.125, %v632_v1  ;;  %v765_v46 = vmax.f32 %v761_v36, %v1939_v31 }
 0x11a   : > { %v1445_v2 = vpop.f32.mrf.mxu0 }
 0x11b   : > { %v1949_v39 = vmul.f32 0.125, %v1445_v2  ;;  %v764_v47 = vmax.f32 %v760_v38, %v1941_v32  ;;  %v796_v38 = vlaneseq }
 0x11c   : > { %v642_v3 = vpop.f32.mrf.mxu0 }
 0x11d   : > { %v1946_v37 = vmul.f32 0.125, %v642_v3  ;;  %v767_v54 = vmax.f32 %v763_v43, %v1949_v39 }
 0x11e   : > { %v1448_v4 = vpop.f32.mrf.mxu0 }
 0x11f   : > { %v1951_v40 = vmul.f32 0.125, %v1448_v4  ;;  %v766_v51 = vmax.f32 %v762_v44, %v1946_v37  ;;  %v797_v44 = vshrl.u32 %v796_v38, 7 }
 0x120   : > { %v652_v5 = vpop.f32.mrf.mxu0 }
 0x121   : > { %v1953_v41 = vmul.f32 0.125, %v652_v5  ;;  %v769_v55 = vmax.f32 %v765_v46, %v1951_v40  ;;  %v1999_v46 = vld [vmem:[#allocation2] sm:$0x1] }
 0x122   : > { %v1451_v6 = vpop.f32.mrf.mxu0 }
 0x123   : > { %v1961_v48 = vmul.f32 0.125, %v1451_v6  ;;  %v768_v56 = vmax.f32 %v764_v47, %v1953_v41 }
 0x124   : > { %v662_v7 = vpop.f32.mrf.mxu0 }
 0x125   : > { %v1957_v45 = vmul.f32 0.125, %v662_v7  ;;  %v771_v63 = vmax.f32 %v767_v54, %v1961_v48 }
 0x126   : > { %v1454_v8 = vpop.f32.mrf.mxu0 }
 0x127   : > { %v1963_v49 = vmul.f32 0.125, %v1454_v8  ;;  %v770_v59 = vmax.f32 %v766_v51, %v1957_v45  ;;  %v2004_v51 = vsub.s32 0, %v797_v44 }
 0x128   : > { %v672_v11 = vpop.f32.mrf.mxu0 }
 0x129   : > { %v1966_v52 = vmul.f32 0.125, %v672_v11  ;;  %v773_v0 = vmax.f32 %v769_v55, %v1963_v49 }
 0x12a   : > { %v1457_v17 = vpop.f32.mrf.mxu0 }
 0x12b   : > { %v1973_v57 = vmul.f32 0.125, %v1457_v17  ;;  %v772_v2 = vmax.f32 %v768_v56, %v1966_v52 }
 0x12c   : > { %v682_v25 = vpop.f32.mrf.mxu0 }
 0x12d   : > { %v1968_v53 = vmul.f32 0.125, %v682_v25  ;;  %v775_v6 = vmax.f32 %v771_v63, %v1973_v57 }
 0x12e   : > { %v1460_v33 = vpop.f32.mrf.mxu0 }
 0x12f   : > { %v1976_v60 = vmul.f32 0.125, %v1460_v33  ;;  %v774_v3 = vmax.f32 %v770_v59, %v1968_v53 }
 0x130   : > { %v692_v42 = vpop.f32.mrf.mxu0 }
 0x131   : > { %v1978_v61 = vmul.f32 0.125, %v692_v42  ;;  %v777_v8 = vmax.f32 %v773_v0, %v1976_v60 }
 0x132   : > { %v1463_v50 = vpop.f32.mrf.mxu0 }
 0x133   : > { %v1986_v4 = vmul.f32 0.125, %v1463_v50  ;;  %v776_v9 = vmax.f32 %v772_v2, %v1978_v61 }
 0x134   : > { %v702_v58 = vpop.f32.mrf.mxu0 }
 0x135   : > { %v1980_v62 = vmul.f32 0.125, %v702_v58  ;;  %v779_v23 = vmax.f32 %v775_v6, %v1986_v4 }
 0x136   : > { %v1466_v1 = vpop.f32.mrf.mxu0 }
 0x137   : > { %v1988_v5 = vmul.f32 0.125, %v1466_v1  ;;  %v778_v11 = vmax.f32 %v774_v3, %v1980_v62 }
 0x138   : > { %v712_v7 = vpop.f32.mrf.mxu0 }
 0x139   : > { %v1994_v17 = vmul.f32 0.125, %v712_v7  ;;  %v781_v25 = vmax.f32 %v777_v8, %v1988_v5  ;;  %v782_v27 = vmax.f32 %v778_v11, %v779_v23 }
 0x13b   : > { %v780_v26 = vmax.f32 %v776_v9, %v1994_v17 }
 0x13d   : > { %v783_v30 = vmax.f32 %v780_v26, %v781_v25 }
 0x13f   : > { %v784_v33 = vmax.f32 %v782_v27, %v783_v30 }
 0x141   : > { %v785_v34 = vrot.slane %v784_v33, 4 }
 0x143   : > { %v786_v35 = vmax.f32 %v784_v33, %v785_v34 }
 0x145   : > { %v787_v36 = vrot.slane %v786_v35, 2 }
 0x147   : > { %v788_v42 = vmax.f32 %v786_v35, %v787_v36 }
 0x149   : > { %v789_v43 = vrot.slane %v788_v42, 1 }
 0x14b   : > { %v790_v47 = vmax.f32 %v788_v42, %v789_v43 }
 0x14d   : > { %v2002_v50 = vmax.f32 %v1999_v46, %v790_v47 }
 0x14f   : > { %v792_v54 = vsub.f32 %v1999_v46, %v2002_v50  ;;  %1081 = vst [vmem:[#allocation2] sm:$0x1] %v2002_v50  ;;  %v2011_v55 = vrot.slane %v2002_v50, %v2004_v51  ;;  %v383_v46 = vld [vmem:[%s1900_s11] sm:$0xff] }
 0x151   : > { %v801_v56 = vsub.f32 %v1911_v15, %v2011_v55  ;;  %v802_v58 = vsub.f32 %v1909_v14, %v2011_v55  ;;  %v803_v59 = vsub.f32 %v1923_v22, %v2011_v55  ;;  %v804_v63 = vsub.f32 %v1915_v18, %v2011_v55 }
 0x152   : > { %v805_v2 = vsub.f32 %v1905_v12, %v2011_v55  ;;  %v806_v6 = vsub.f32 %v1903_v10, %v2011_v55  ;;  %v807_v14 = vsub.f32 %v1913_v16, %v2011_v55  ;;  %v808_v18 = vsub.f32 %v1907_v13, %v2011_v55 }
 0x153   : > { %v833_v0 = vmul.f32 1.442695, %v801_v56  ;;  %v835_v1 = vmul.f32 1.442695, %v802_v58  ;;  %v837_v3 = vmul.f32 1.442695, %v803_v59  ;;  %v809_v12 = vsub.f32 %v1919_v20, %v2011_v55 }
 0x154   : > { %v839_v15 = vmul.f32 1.442695, %v804_v63  ;;  %v841_v22 = vmul.f32 1.442695, %v805_v2  ;;  %v843_v7 = vmul.f32 1.442695, %v806_v6  ;;  %v810_v10 = vsub.f32 %v1917_v19, %v2011_v55 }
 0x155   : > { %1543 = vpow2.f32 %v833_v0  ;;  %v845_v8 = vmul.f32 1.442695, %v807_v14  ;;  %v847_v9 = vmul.f32 1.442695, %v808_v18  ;;  %v811_v16 = vsub.f32 %v1927_v24, %v2011_v55 }
 0x156   : > { %1545 = vpow2.f32 %v835_v1  ;;  %v849_v11 = vmul.f32 1.442695, %v809_v12  ;;  %v812_v13 = vsub.f32 %v1921_v21, %v2011_v55  ;;  %v851_v25 = vmul.f32 1.442695, %v810_v10 }
 0x157   : > { %1547 = vpow2.f32 %v837_v3  ;;  %v813_v26 = vsub.f32 %v1935_v29, %v2011_v55  ;;  %v853_v19 = vmul.f32 1.442695, %v811_v16  ;;  %v814_v30 = vsub.f32 %v1933_v28, %v2011_v55 }
 0x158   : > { %1549 = vpow2.f32 %v839_v15  ;;  %v855_v33 = vmul.f32 1.442695, %v812_v13  ;;  %v815_v35 = vsub.f32 %v1941_v32, %v2011_v55  ;;  %v816_v42 = vsub.f32 %v1939_v31, %v2011_v55 }
 0x159   : > { %1551 = vpow2.f32 %v841_v22  ;;  %v857_v29 = vmul.f32 1.442695, %v813_v26  ;;  %v859_v28 = vmul.f32 1.442695, %v814_v30  ;;  %v817_v47 = vsub.f32 %v1946_v37, %v2011_v55 }
 0x15a   : > { %1553 = vpow2.f32 %v843_v7  ;;  %v832_v32 = vsub.f32 %v1988_v5, %v2011_v55  ;;  %v861_v56 = vmul.f32 1.442695, %v815_v35  ;;  %v818_v31 = vsub.f32 %v1949_v39, %v2011_v55 }
 0x15b   : > { %1555 = vpow2.f32 %v845_v8  ;;  %v831_v63 = vsub.f32 %v1994_v17, %v2011_v55  ;;  %v863_v0 = vmul.f32 1.442695, %v816_v42  ;;  %v819_v5 = vsub.f32 %v1953_v41, %v2011_v55 }
 0x15c   : > { %1557 = vpow2.f32 %v847_v9  ;;  %v865_v2 = vmul.f32 1.442695, %v817_v47  ;;  %v830_v3 = vsub.f32 %v1986_v4, %v2011_v55  ;;  %v895_v6 = vmul.f32 1.442695, %v832_v32 }
 0x15d   : > { %1559 = vpow2.f32 %v849_v11  ;;  %v820_v17 = vsub.f32 %v1951_v40, %v2011_v55  ;;  %v867_v14 = vmul.f32 1.442695, %v818_v31  ;;  %v829_v22 = vsub.f32 %v1980_v62, %v2011_v55 }
 0x15e   : > { %1561 = vpow2.f32 %v851_v25  ;;  %v893_v18 = vmul.f32 1.442695, %v831_v63  ;;  %v821_v4 = vsub.f32 %v1957_v45, %v2011_v55  ;;  %v869_v12 = vmul.f32 1.442695, %v819_v5 }
 0x15f   : > { %1563 = vpow2.f32 %v853_v19  ;;  %v828_v8 = vsub.f32 %v1976_v60, %v2011_v55  ;;  %v891_v10 = vmul.f32 1.442695, %v830_v3  ;;  %v822_v62 = vsub.f32 %v1961_v48, %v2011_v55 }
 0x160   : > { %1565 = vpow2.f32 %v855_v33  ;;  %v871_v16 = vmul.f32 1.442695, %v820_v17  ;;  %v827_v11 = vsub.f32 %v1978_v61, %v2011_v55  ;;  %v889_v45 = vmul.f32 1.442695, %v829_v22 }
 0x161   : > { %1567 = vpow2.f32 %v857_v29  ;;  %v823_v60 = vsub.f32 %v1966_v52, %v2011_v55  ;;  %v873_v26 = vmul.f32 1.442695, %v821_v4  ;;  %v826_v19 = vsub.f32 %v1973_v57, %v2011_v55 }
 0x162   : > { %v2035_v23 = vpop.eup %1543  ;;  %1569 = vpow2.f32 %v859_v28  ;;  %v824_v61 = vsub.f32 %v1963_v49, %v2011_v55  ;;  %v875_v33 = vmul.f32 1.442695, %v822_v62  ;;  %v885_v35 = vmul.f32 1.442695, %v827_v11 }
 0x163   : > { %v2039_v20 = vpop.eup %1545  ;;  %1571 = vpow2.f32 %v861_v56  ;;  %v883_v42 = vmul.f32 1.442695, %v826_v19 }
 0x164   : > { %v899_v27 = vadd.f32 %v2039_v20, %v2035_v23  ;;  %v2045_v24 = vpop.eup %1547  ;;  %1573 = vpow2.f32 %v863_v0 }
 0x165   : > { %v2050_v34 = vpop.eup %1549  ;;  %1575 = vpow2.f32 %v865_v2 }
 0x166   : > { %v900_v21 = vadd.f32 %v2045_v24, %v899_v27  ;;  %v2055_v38 = vpop.eup %1551  ;;  %1577 = vpow2.f32 %v895_v6  ;;  %v887_v27 = vmul.f32 1.442695, %v828_v8 }
 0x167   : > { %v2060_v44 = vpop.eup %1553  ;;  %1579 = vpow2.f32 %v867_v14 }
 0x168   : > { %v901_v36 = vadd.f32 %v2050_v34, %v900_v21  ;;  %v2067_v59 = vpop.eup %1555  ;;  %1581 = vpow2.f32 %v893_v18  ;;  %v825_v21 = vsub.f32 %v1968_v53, %v2011_v55 }
 0x169   : > { %v2074_v37 = vpop.eup %1557  ;;  %1583 = vpow2.f32 %v869_v12 }
 0x16a   : > { %v902_v43 = vadd.f32 %v2055_v38, %v901_v36  ;;  %v2081_v15 = vpop.eup %1559  ;;  %1585 = vpow2.f32 %v891_v10  ;;  %v877_v36 = vmul.f32 1.442695, %v823_v60  ;;  %v881_v47 = vmul.f32 1.442695, %v825_v21 }
 0x16b   : > { %v2088_v7 = vpop.eup %1561  ;;  %1587 = vpow2.f32 %v871_v16 }
 0x16c   : > { %v903_v58 = vadd.f32 %v2060_v44, %v902_v43  ;;  %v2095_v9 = vpop.eup %1563  ;;  %1589 = vpow2.f32 %v889_v45  ;;  %v879_v43 = vmul.f32 1.442695, %v824_v61 }
 0x16d   : > { %v1566_v25 = vpop.eup %1565  ;;  %1591 = vpow2.f32 %v873_v26  ;;  %v390_v26 = vld [vmem:[%s1900_s11 + $0x38] sm:$0xff] }
 0x16e   : > { %v904_v1 = vadd.f32 %v2067_v59, %v903_v58  ;;  %v1568_v30 = vpop.eup %1567  ;;  %1593 = vpow2.f32 %v887_v27  ;;  %v897_v27 = vld [vmem:[#allocation3] sm:$0x1] }
 0x16f   : > { %v1570_v29 = vpop.eup %1569  ;;  %1595 = vpow2.f32 %v875_v33  ;;  %v392_v33 = vld [vmem:[%s1900_s11 + $0x48] sm:$0xff] }
 0x170   : > { %v905_v39 = vadd.f32 %v2074_v37, %v904_v1  ;;  %v1572_v28 = vpop.eup %1571  ;;  %1597 = vpow2.f32 %v885_v35  ;;  %v391_v35 = vld [vmem:[%s1900_s11 + $0x40] sm:$0xff] }
 0x171   : > { %v1574_v32 = vpop.eup %1573  ;;  %1599 = vpow2.f32 %v877_v36  ;;  %v396_v36 = vld [vmem:[%s1900_s11 + $0x68] sm:$0xff] }
 0x172   : > { %v906_v41 = vadd.f32 %v2081_v15, %v905_v39  ;;  %v2110_v56 = vpop.eup %1575  ;;  %1601 = vpow2.f32 %v883_v42  ;;  %v395_v42 = vld [vmem:[%s1900_s11 + $0x60] sm:$0xff] }
 0x173   : > { %v2112_v55 = vpop.eup %1577  ;;  %1603 = vpow2.f32 %v879_v43 }
 0x174   : > { %v907_v40 = vadd.f32 %v2088_v7, %v906_v41  ;;  %v1580_v58 = vpop.eup %1579  ;;  %1605 = vpow2.f32 %v881_v47  ;;  %1347 = vmatprep.subr.mxu1 %v2112_v55 }
 0x175   : > { %v1582_v63 = vpop.eup %1581  ;;  %1348 = vmatpush3.msra.mxu1 %v1574_v32 }
 0x176   : > { %v908_v13 = vadd.f32 %v2095_v9, %v907_v40  ;;  %v1584_v0 = vpop.eup %1583  ;;  %1349 = vmatprep.subr.mxu1 %v1582_v63 }
 0x177   : > { %v1586_v5 = vpop.eup %1585  ;;  %1350 = vmatpush3.msra.mxu1 %v1572_v28 }
 0x178   : > { %v909_v48 = vadd.f32 %v1566_v25, %v908_v13  ;;  %v1588_v2 = vpop.eup %1587  ;;  %1351 = vmatprep.subr.mxu1 %v1586_v5 }
 0x179   : > { %v1590_v6 = vpop.eup %1589  ;;  %1352 = vmatpush3.msra.mxu1 %v1570_v29 }
 0x17a   : > { %v910_v52 = vadd.f32 %v1568_v30, %v909_v48  ;;  %v1592_v39 = vpop.eup %1591  ;;  %1353 = vmatprep.subr.mxu1 %v1590_v6  ;;  %v389_v48 = vld [vmem:[%s1900_s11 + $0x30] sm:$0xff] }
 0x17b   : > { %v1594_v14 = vpop.eup %1593  ;;  %1354 = vmatpush3.msra.mxu1 %v1568_v30 }
 0x17c   : > { %v911_v57 = vadd.f32 %v1570_v29, %v910_v52  ;;  %v1596_v22 = vpop.eup %1595  ;;  %1355 = vmatprep.subr.mxu1 %v1594_v14  ;;  %v394_v52 = vld [vmem:[%s1900_s11 + $0x58] sm:$0xff]  ;;  %v393_v29 = vld [vmem:[%s1900_s11 + $0x50] sm:$0xff] }
 0x17d   : > { %v1598_v41 = vpop.eup %1597  ;;  %1356 = vmatpush3.msra.mxu1 %v1566_v25 }
 0x17e   : > { %v912_v49 = vadd.f32 %v1572_v28, %v911_v57  ;;  %v1600_v4 = vpop.eup %1599  ;;  %1357 = vmatprep.subr.mxu1 %v1598_v41  ;;  %v398_v57 = vld [vmem:[%s1900_s11 + $0x78] sm:$0xff]  ;;  %v397_v28 = vld [vmem:[%s1900_s11 + $0x70] sm:$0xff] }
 0x17f   : > { %v1602_v8 = vpop.eup %1601  ;;  %1358 = vmatpush3.msra.mxu1 %v2095_v9 }
 0x180   : > { %v913_v53 = vadd.f32 %v1574_v32, %v912_v49  ;;  %v1604_v10 = vpop.eup %1603  ;;  %1359 = vmatprep.subr.mxu1 %v1602_v8 }
 0x181   : > { %v1606_v62 = vpop.eup %1605  ;;  %1360 = vmatpush3.msra.mxu1 %v2088_v7  ;;  %v793_v7 = vmul.f32 1.442695, %v792_v54  ;;  %v386_v54 = vld [vmem:[%s1900_s11 + $0x18] sm:$0xff] }
 0x182   : > { %v914_v31 = vadd.f32 %v2110_v56, %v913_v53  ;;  %1361 = vmatprep.subr.mxu1 %v1606_v62 }
 0x183   : > { %1362 = vmatpush3.msra.mxu1 %v2081_v15  ;;  %1607 = vpow2.f32 %v793_v7 }
 0x184   : > { %v915_v1 = vadd.f32 %v1580_v58, %v914_v31  ;;  %1363 = vmatprep.subr.mxu1 %v1604_v10 }
 0x185   : > { %1364 = vmatpush3.msra.mxu1 %v2074_v37  ;;  %v388_v37 = vld [vmem:[%s1900_s11 + $0x28] sm:$0xff] }
 0x186   : > { %v916_v3 = vadd.f32 %v1584_v0, %v915_v1  ;;  %1365 = vmatprep.subr.mxu1 %v1600_v4 }
 0x187   : > { %1366 = vmatpush3.msra.mxu1 %v2067_v59 }
 0x188   : > { %v917_v17 = vadd.f32 %v1588_v2, %v916_v3  ;;  %1367 = vmatprep.subr.mxu1 %v1596_v22 }
 0x189   : > { %1368 = vmatpush3.msra.mxu1 %v2060_v44 }
 0x18a   : > { %v918_v18 = vadd.f32 %v1592_v39, %v917_v17  ;;  %1369 = vmatprep.subr.mxu1 %v1592_v39 }
 0x18b   : > { %1370 = vmatpush3.msra.mxu1 %v2055_v38  ;;  %v385_v38 = vld [vmem:[%s1900_s11 + $0x10] sm:$0xff] }
 0x18c   : > { %v919_v12 = vadd.f32 %v1596_v22, %v918_v18  ;;  %1371 = vmatprep.subr.mxu1 %v1588_v2 }
 0x18d   : > { %1372 = vmatpush3.msra.mxu1 %v2050_v34 }
 0x18e   : > { %v920_v40 = vadd.f32 %v1600_v4, %v919_v12  ;;  %1373 = vmatprep.subr.mxu1 %v1584_v0 }
 0x18f   : > { %1374 = vmatpush3.msra.mxu1 %v2045_v24 }
 0x190   : > { %v921_v16 = vadd.f32 %v1604_v10, %v920_v40  ;;  %1375 = vmatprep.subr.mxu1 %v1580_v58  ;;  %v1608_v19 = vpop.eup %1607 }
 0x191   : > { %1376 = vmatpush3.msra.mxu1 %v2039_v20  ;;  %v387_v20 = vld [vmem:[%s1900_s11 + $0x20] sm:$0xff]  ;;  %v898_v30 = vmul.f32 %v1608_v19, %v897_v27  ;;  %v950_v47 = vrot.slane %v1608_v19, %v2004_v51 }
 0x192   : > { %v922_v11 = vadd.f32 %v1606_v62, %v921_v16  ;;  %1377 = vmatprep.subr.mxu1 %v2110_v56 }
 0x193   : > { %1378 = vmatpush3.msra.mxu1 %v2035_v23  ;;  %v952_v53 = vmul.f32 0.0, %v950_v47 }
 0x194   : > { %v923_v45 = vadd.f32 %v1602_v8, %v922_v11  ;;  %1025 = vmatmul.mubr.f32.vlgmr.msra.gmra.mxu1 %v383_v46 }
 0x195   : > { %1029 = vmatprep.mubr.f32.mxu1 %v386_v54 }
 0x196   : > { %v924_v13 = vadd.f32 %v1598_v41, %v923_v45 }
 0x198   : > { %v925_v9 = vadd.f32 %v1594_v14, %v924_v13  ;;  %1030 = vmatmul.mubr.f32.gmra.mxu1 %v385_v38 }
 0x199   : > { %1034 = vmatprep.mubr.f32.mxu1 %v388_v37 }
 0x19a   : > { %v926_v15 = vadd.f32 %v1590_v6, %v925_v9 }
 0x19c   : > { %v927_v59 = vadd.f32 %v1586_v5, %v926_v15  ;;  %1035 = vmatmul.mubr.f32.gmra.mxu1 %v387_v20 }
 0x19d   : > { %1039 = vmatprep.mubr.f32.mxu1 %v390_v26 }
 0x19e   : > { %v928_v44 = vadd.f32 %v1582_v63, %v927_v59 }
 0x1a0   : > { %v929_v50 = vadd.f32 %v2112_v55, %v928_v44  ;;  %1040 = vmatmul.mubr.f32.gmra.mxu1 %v389_v48 }
 0x1a1   : > { %1044 = vmatprep.mubr.f32.mxu1 %v392_v33 }
 0x1a2   : > { %v930_v34 = vrot.slane %v929_v50, 4 }
 0x1a4   : > { %v931_v24 = vadd.f32 %v930_v34, %v929_v50  ;;  %1045 = vmatmul.mubr.f32.gmra.mxu1 %v391_v35 }
 0x1a5   : > { %1049 = vmatprep.mubr.f32.mxu1 %v394_v52 }
 0x1a6   : > { %v932_v25 = vrot.slane %v931_v24, 2 }
 0x1a8   : > { %v933_v60 = vadd.f32 %v932_v25, %v931_v24  ;;  %1050 = vmatmul.mubr.f32.gmra.mxu1 %v393_v29 }
 0x1a9   : > { %1054 = vmatprep.mubr.f32.mxu1 %v396_v36 }
 0x1aa   : > { %v934_v23 = vrot.slane %v933_v60, 1 }
 0x1ac   : > { %v935_v61 = vadd.f32 %v934_v23, %v933_v60  ;;  %1055 = vmatmul.mubr.f32.gmra.mxu1 %v395_v42 }
 0x1ad   : > { %1059 = vmatprep.mubr.f32.mxu1 %v398_v57 }
 0x1ae   : > { %v936_v21 = vadd.f32 %v935_v61, %v898_v30 }
 0x1b0   : > { %937 = vst [vmem:[#allocation3] sm:$0x1] %v936_v21  ;;  %1060 = vmatmul.mubr.f32.gmra.mxu1 %v397_v28 }
 0x1b7   : > { %v1085_v43 = vld [vmem:[#allocation3] sm:$0x1] }
 0x1b8   : > { %1609 = vrcp.f32 %v1085_v43 }
 0x1c5   : > { %v1610_v32 = vpop.eup %1609 }
 0x1c6   : > { %v1099_v63 = vrot.slane %v1610_v32, %v2004_v51 }
 0x254   : > { %v1379_v49 = vpop.f32.mrf.mxu1 }
 0x256   : > { %v1380_v56 = vpop.f32.mrf.mxu1 }
 0x257   : > { %v1381_v55 = vadd.f32 %v1380_v56, %v1379_v49 }
 0x258   : > { %v1382_v58 = vpop.f32.mrf.mxu1 }
 0x259   : > { %v1065_v31 = vadd.f32 %v1381_v55, %v952_v53 }
 0x25a   : > { %v1383_v0 = vpop.f32.mrf.mxu1 }
 0x25b   : > { %v1101_v1 = vmul.f32 %v1099_v63, %v1065_v31  ;;  %v1384_v5 = vadd.f32 %v1383_v0, %v1382_v58 }
 0x25c   : > { %v1385_v2 = vpop.f32.mrf.mxu1 }
 0x25d   : > { %1109 = vst [vmem:[%s2150_s20] sm:$0xff] %v1101_v1  ;;  %v1066_v3 = vadd.f32 %v1384_v5, %v952_v53 }
 0x25e   : > { %v1386_v6 = vpop.f32.mrf.mxu1 }
 0x25f   : > { %v1102_v39 = vmul.f32 %v1099_v63, %v1066_v3  ;;  %v1387_v17 = vadd.f32 %v1386_v6, %v1385_v2 }
 0x260   : > { %v1388_v14 = vpop.f32.mrf.mxu1 }
 0x261   : > { %1110 = vst [vmem:[%s2150_s20 + $0x8] sm:$0xff] %v1102_v39  ;;  %v1067_v22 = vadd.f32 %v1387_v17, %v952_v53 }
 0x262   : > { %v1389_v18 = vpop.f32.mrf.mxu1 }
 0x263   : > { %v1103_v51 = vmul.f32 %v1099_v63, %v1067_v22  ;;  %v1390_v41 = vadd.f32 %v1389_v18, %v1388_v14 }
 0x264   : > { %v1391_v4 = vpop.f32.mrf.mxu1 }
 0x265   : > { %1111 = vst [vmem:[%s2150_s20 + $0x10] sm:$0xff] %v1103_v51  ;;  %v1068_v12 = vadd.f32 %v1390_v41, %v952_v53 }
 0x266   : > { %v1392_v8 = vpop.f32.mrf.mxu1 }
 0x267   : > { %v1104_v10 = vmul.f32 %v1099_v63, %v1068_v12  ;;  %v1393_v40 = vadd.f32 %v1392_v8, %v1391_v4 }
 0x268   : > { %v1394_v62 = vpop.f32.mrf.mxu1 }
 0x269   : > { %1112 = vst [vmem:[%s2150_s20 + $0x18] sm:$0xff] %v1104_v10  ;;  %v1069_v16 = vadd.f32 %v1393_v40, %v952_v53 }
 0x26a   : > { %v1395_v11 = vpop.f32.mrf.mxu1 }
 0x26b   : > { %v1105_v45 = vmul.f32 %v1099_v63, %v1069_v16  ;;  %v1396_v13 = vadd.f32 %v1395_v11, %v1394_v62 }
 0x26c   : > { %v1397_v7 = vpop.f32.mrf.mxu1 }
 0x26d   : > { %1113 = vst [vmem:[%s2150_s20 + $0x20] sm:$0xff] %v1105_v45  ;;  %v1070_v9 = vadd.f32 %v1396_v13, %v952_v53 }
 0x26e   : > { %v1398_v15 = vpop.f32.mrf.mxu1 }
 0x26f   : > { %v1106_v59 = vmul.f32 %v1099_v63, %v1070_v9  ;;  %v1399_v44 = vadd.f32 %v1398_v15, %v1397_v7 }
 0x270   : > { %v1400_v46 = vpop.f32.mrf.mxu1 }
 0x271   : > { %1114 = vst [vmem:[%s2150_s20 + $0x28] sm:$0xff] %v1106_v59  ;;  %v1071_v50 = vadd.f32 %v1399_v44, %v952_v53 }
 0x272   : > { %v1401_v54 = vpop.f32.mrf.mxu1 }
 0x273   : > { %v1107_v34 = vmul.f32 %v1099_v63, %v1071_v50  ;;  %v1402_v38 = vadd.f32 %v1401_v54, %v1400_v46 }
 0x275   : > { %1115 = vst [vmem:[%s2150_s20 + $0x30] sm:$0xff] %v1107_v34  ;;  %v1072_v24 = vadd.f32 %v1402_v38, %v952_v53 }
 0x277   : > { %v1108_v37 = vmul.f32 %v1099_v63, %v1072_v24 }
 0x279   : > { %1116 = vst [vmem:[%s2150_s20 + $0x38] sm:$0xff] %v1108_v37 }
 0x27a   : > { %1624 = shalt.err (!%p1621_p10)
}
 0x27b   : > { %s1625_s24 = scalar_lea.hbm %s2167_s5, 1024  ;;  %s1629_s20 = scalar_lea.hbm %s2226_s3, 4096 }
 0x27c   : > { %p1626_p11 = scmp.ne.s32.totalorder %s2167_s5, %s1625_s24  ;;  %p1630_p0 = scmp.lt.s32.totalorder %s2167_s5, %s2226_s3 }
 0x27d   : > { %p1631_p1 = scmp.lt.s32.totalorder %s1629_s20, %s1625_s24 }
 0x27e   : > { %p1627_p12 = pnand %p1626_p11, %p1791_p8 }
 0x27f   : > { %p1632_p2 = por %p1631_p1, %p1630_p0 }
 0x280   : > { %p1628_p13 = pneg %p1627_p12 }
 0x282   : > { %p1633_p3 = pnand %p1632_p2, %p1628_p13 }
 0x284   : > { %1636 = shalt.err (!%p1633_p3)
}
 0x285   : > { %s1708_s29 = smov 128   ;;  %s1709_s16 = smov 256  }
 0x286   : > { %s1710_s30 = smov 8  }
 0x287   : > { %1467 = dma.vmem_to_hbm [thread:$0]  (%p1791_p8), %s2161_s28, 1024, %s2167_s5, %s2172_s15, %s1708_s29, %s1709_s16, %s1710_s30  }
 0x288 PF: > { %p1473_p4 = scmp.ge.s32.totalorder %s1703_s19, 2  ;;  %s1147_s6 = sand.u32 1, %s1675_s12  }
 0x289   : > { %s1148_s7 = scalar_lea.sflag [#allocation7], %s1147_s6 }
 0x28a   : > { %p1470_p5 = pnand %p1473_p4, %p1795_p9 }
 0x28c   : > { %p1471_p6 = pneg %p1470_p5 }
 0x28e   : > { %1670 = dma.done.wait (%p1471_p6), %s1148_s7, 1024  }
 0x28f   : > { %1672 = vsyncadd (%p1471_p6), %s1148_s7, 4294966272  ;;  %s16_s19 = sadd.s32 1, %s1703_s19   ;;  %s2230_s12 = smov %s1679_s13 }
 0x290   : > { %p13_p7 = scmp.ge.s32.totalorder %s16_s19, 6   ;;  %s2231_s13 = smov %s1683_s14 }
 0x291   : > { %s2232_s14 = smov %s1803_s4  ;;  %s2233_s15 = smov %s1695_s17 }
 0x292   : > { %s2234_s16 = smov %s1699_s18  ;;  %s2235_s17 = smov %s2238_s22 }
 0x293   : > { %s2236_s18 = smov %s2242_s23  ;;  %15 = sbr.rel (!%p13_p7) target bundleno = 5 (0x5), region = 124 }
 0x298   :  { %1153 = vsyncpa [#allocation7], 1 }
 0x299   :  { %1155 = vsyncpa [#allocation7 + $0x1], 1 }

</bundles_post_ra>
